<compile_context>
chip_gen: v6e
topology: v6e:2x2x1
jax: 0.10.0
libtpu: 0.0.40
codegen_flags: <defaults>
</compile_context>

<pallas_src>
import functools

import jax
import jax.numpy as jnp
from jax.experimental import pallas as pl
from jax.experimental.pallas import tpu as pltpu


def _round_up(n, m):
    return ((n + m - 1) // m) * m


def _leaky_relu(h):
    # nn.LeakyReLU default negative_slope = 0.01
    return jnp.maximum(h, 0.01 * h)


# ----------------------------------------------------------------------------
# Pallas kernels
# ----------------------------------------------------------------------------

def _token_heads_kernel(x_ref, w1_ref, b1_ref, w2_ref, b2_ref, out_ref):
    """All token-level Decoder heads fused: Linear -> LeakyReLU -> Linear.

    w1/b1: per-head first layers concatenated along the output axis.
    w2/b2: per-head second layers packed block-diagonally; output axis padded
           to a multiple of 128 so the store is lane-dense (no masked vst).
    """
    # TODO(synk): at production sizes cast matmul operands to bf16
    # (keep preferred_element_type=f32) for v6e/v7x MXU peak.
    x = x_ref[...]
    h = jnp.dot(x, w1_ref[...], preferred_element_type=jnp.float32) + b1_ref[...]
    h = _leaky_relu(h)
    y = jnp.dot(h, w2_ref[...], preferred_element_type=jnp.float32) + b2_ref[...]
    out_ref[...] = y.astype(out_ref.dtype)


def _cell_path(x, wc, bc, wf1, bf1, wf2, bf2, wsb1, bsb1, wsb2, bsb2):
    """CellEncoder + fused sequence/batch decoder heads (shared body)."""
    # Conv2d(1, 1, (1, D)) over [B, 1, S, D] == per-(b, s) dot over D + scalar bias.
    # TODO(synk): at production D (>=128) route this contraction through the MXU
    # (x2d @ [D,1]) instead of a VPU multiply + XLU lane reduction.
    v = jnp.sum(x * wc, axis=-1) + bc                    # [B, S]
    v = jnp.maximum(v, 0.0)                              # ReLU
    h = jnp.dot(v, wf1, preferred_element_type=jnp.float32) + bf1
    h = jnp.maximum(h, 0.0)                              # ReLU
    # TODO(synk): Dropout(p=0.1) treated as identity (eval-mode semantics).
    emb = jnp.dot(h, wf2, preferred_element_type=jnp.float32) + bf2     # [B, D]
    # fused sequence + batch decoder heads (block-diagonal second layer)
    hsb = _leaky_relu(jnp.dot(emb, wsb1, preferred_element_type=jnp.float32) + bsb1)
    sb = jnp.dot(hsb, wsb2, preferred_element_type=jnp.float32) + bsb2  # [B, SBpad]
    return sb


def _cell_heads_kernel(x_ref, wc_ref, bc_ref, wf1_ref, bf1_ref, wf2_ref, bf2_ref,
                       wsb1_ref, bsb1_ref, wsb2_ref, bsb2_ref, sb_ref):
    sb = _cell_path(x_ref[...], wc_ref[...], bc_ref[0, 0],
                    wf1_ref[...], bf1_ref[...], wf2_ref[...], bf2_ref[...],
                    wsb1_ref[...], bsb1_ref[...], wsb2_ref[...], bsb2_ref[...])
    sb_ref[...] = sb.astype(sb_ref.dtype)


def _cell_heads_neighbor_kernel(x_ref, cell_ref, wc_ref, bc_ref,
                                wf1_ref, bf1_ref, wf2_ref, bf2_ref,
                                wsb1_ref, bsb1_ref, wsb2_ref, bsb2_ref,
                                wn_ref, bn_ref, sb_ref, nb_ref):
    sb = _cell_path(x_ref[...], wc_ref[...], bc_ref[0, 0],
                    wf1_ref[...], bf1_ref[...], wf2_ref[...], bf2_ref[...],
                    wsb1_ref[...], bsb1_ref[...], wsb2_ref[...], bsb2_ref[...])
    sb_ref[...] = sb.astype(sb_ref.dtype)
    # NeighborPrediction: concat(first half, second half) @ Wn + bn, computed as
    # two half-dots against the row-split weight (avoids an in-kernel concat).
    cell = cell_ref[...]                                 # [B, D] (CLS tokens)
    half = cell.shape[0] // 2
    d = cell.shape[1]
    wn = wn_ref[...]                                     # [2D, NBpad]
    nb = (jnp.dot(cell[:half, :], wn[:d, :], preferred_element_type=jnp.float32)
          + jnp.dot(cell[half:, :], wn[d:, :], preferred_element_type=jnp.float32)
          + bn_ref[...])
    nb_ref[...] = nb.astype(nb_ref.dtype)


# ----------------------------------------------------------------------------
# pallas_call wrappers
# ----------------------------------------------------------------------------

def token_heads_apply(x2d, w1cat, b1cat, w2bd, b2cat, *, row_tile=512):
    """Fused token-level decoders; rows tiled (padded) with resident weights."""
    R, D = x2d.shape
    Hh = w1cat.shape[1]
    Tp = w2bd.shape[1]

    # Pad rows so the grid always divides cleanly (multiple of 8 sublanes or
    # of the full row tile); padded rows are sliced off afterwards.
    if R >= row_tile:
        tr = row_tile
        Rp = _round_up(R, row_tile)
    else:
        Rp = _round_up(R, 8)
        tr = Rp
    if Rp != R:
        x2d = jnp.pad(x2d, ((0, Rp - R), (0, 0)))

    # TODO(synk): for very large token vocabularies also tile the output (N)
    # axis in multiples of 128 and size tiles against v7x's 64 MiB VMEM.
    out = pl.pallas_call(
        _token_heads_kernel,
        out_shape=jax.ShapeDtypeStruct((Rp, Tp), x2d.dtype),
        grid_spec=pltpu.PrefetchScalarGridSpec(
            num_scalar_prefetch=0,
            grid=(Rp // tr,),
            in_specs=[
                pl.BlockSpec((tr, D), lambda i: (i, 0)),
                # weights/biases: constant index_map -> stay resident in VMEM
                pl.BlockSpec((D, Hh), lambda i: (0, 0)),
                pl.BlockSpec((1, Hh), lambda i: (0, 0)),
                pl.BlockSpec((Hh, Tp), lambda i: (0, 0)),
                pl.BlockSpec((1, Tp), lambda i: (0, 0)),
            ],
            out_specs=pl.BlockSpec((tr, Tp), lambda i: (i, 0)),
        ),
        compiler_params=pltpu.CompilerParams(
            dimension_semantics=("parallel",)),
    )(x2d, w1cat, b1cat, w2bd, b2cat)
    return out[:R] if Rp != R else out


def cell_heads_apply(x, cell_params, sb_params, cell=None, nb_params=None):
    """Fused cell encoder + sequence/batch heads (+ neighbor head if given)."""
    B, S, D = x.shape
    wc, bc, wf1, bf1, wf2, bf2 = cell_params
    wsb1, bsb1, wsb2, bsb2 = sb_params
    F1 = wf1.shape[1]          # 512
    H4 = wsb1.shape[1]         # 2 heads * 2D
    SBp = wsb2.shape[1]        # padded (>=128) output lanes
    dtype = x.dtype

    x_spec = pl.BlockSpec((B, S, D), lambda i: (0, 0, 0))
    weight_specs = [
        pl.BlockSpec((1, D), lambda i: (0, 0)),                    # wc  (conv weight)
        pl.BlockSpec(memory_space=pltpu.MemorySpace.SMEM),         # bc  (scalar, SMEM)
        pl.BlockSpec((S, F1), lambda i: (0, 0)),                   # wf1
        pl.BlockSpec((1, F1), lambda i: (0, 0)),                   # bf1
        pl.BlockSpec((F1, D), lambda i: (0, 0)),                   # wf2
        pl.BlockSpec((1, D), lambda i: (0, 0)),                    # bf2
        pl.BlockSpec((D, H4), lambda i: (0, 0)),                   # wsb1
        pl.BlockSpec((1, H4), lambda i: (0, 0)),                   # bsb1
        pl.BlockSpec((H4, SBp), lambda i: (0, 0)),                 # wsb2
        pl.BlockSpec((1, SBp), lambda i: (0, 0)),                  # bsb2
    ]
    cparams = pltpu.CompilerParams(dimension_semantics=("arbitrary",))

    if nb_params is None:
        return pl.pallas_call(
            _cell_heads_kernel,
            out_shape=jax.ShapeDtypeStruct((B, SBp), dtype),
            grid_spec=pltpu.PrefetchScalarGridSpec(
                num_scalar_prefetch=0, grid=(1,),
                in_specs=[x_spec] + weight_specs,
                out_specs=pl.BlockSpec((B, SBp), lambda i: (0, 0))),
            compiler_params=cparams,
        )(x, wc, bc, wf1, bf1, wf2, bf2, wsb1, bsb1, wsb2, bsb2)

    wn, bn = nb_params
    NBp = wn.shape[1]
    half = B // 2
    return pl.pallas_call(
        _cell_heads_neighbor_kernel,
        out_shape=(jax.ShapeDtypeStruct((B, SBp), dtype),
                   jax.ShapeDtypeStruct((half, NBp), dtype)),
        grid_spec=pltpu.PrefetchScalarGridSpec(
            num_scalar_prefetch=0, grid=(1,),
            in_specs=([x_spec, pl.BlockSpec((B, D), lambda i: (0, 0))]
                      + weight_specs
                      + [pl.BlockSpec((wn.shape[0], NBp), lambda i: (0, 0)),
                         pl.BlockSpec((1, NBp), lambda i: (0, 0))]),
            out_specs=(pl.BlockSpec((B, SBp), lambda i: (0, 0)),
                       pl.BlockSpec((half, NBp), lambda i: (0, 0)))),
        compiler_params=cparams,
    )(x, cell, wc, bc, wf1, bf1, wf2, bf2, wsb1, bsb1, wsb2, bsb2, wn, bn)


# ----------------------------------------------------------------------------
# Head fusion helpers (lane-dense, block-diagonal packing) -- run ONCE at setup
# ----------------------------------------------------------------------------

def _fuse_decoder_heads(heads, dim):
    """heads: list of (w1[D,2D], b1[1,2D], w2[2D,T], b2[1,T]).

    Returns (w1cat, b1cat, w2_blockdiag, b2cat, per-head (offset, size))."""
    hdim = 2 * dim
    total = sum(h[2].shape[1] for h in heads)
    tpad = max(128, _round_up(total, 128))
    w1cat = jnp.concatenate([h[0] for h in heads], axis=1)
    b1cat = jnp.concatenate([h[1] for h in heads], axis=1)
    w2bd = jnp.zeros((hdim * len(heads), tpad), jnp.float32)
    b2cat = jnp.zeros((1, tpad), jnp.float32)
    offs, off = [], 0
    for i, (_, _, w2, b2) in enumerate(heads):
        t = w2.shape[1]
        w2bd = w2bd.at[i * hdim:(i + 1) * hdim, off:off + t].set(w2)
        b2cat = b2cat.at[:, off:off + t].set(b2)
        offs.append((off, t))
        off += t
    return w1cat, b1cat, w2bd, b2cat, offs


def _pad_lanes(w, b, lanes=128):
    """Pad a [K, T] weight / [1, T] bias to a lane-dense multiple of `lanes`."""
    t = w.shape[1]
    tp = max(lanes, _round_up(t, lanes))
    wp = jnp.zeros((w.shape[0], tp), w.dtype).at[:, :t].set(w)
    bp = jnp.zeros((1, tp), b.dtype).at[:, :t].set(b)
    return wp, bp, t


def _head_selection(params, predict_gene, predict_disease):
    names, plist = [], []
    if predict_gene:
        names.append("gene_logit"); plist.append(params["gene_decoder"])
    names.append("exp_bin_logit"); plist.append(params["exp_bin_decoder"])
    if predict_disease:
        names.append("disease_logit"); plist.append(params["disease_decoder"])
    return names, plist


def fuse_heads(params, *, predict_gene, predict_disease, is_st):
    """Pack all head weights once, outside the jitted forward (arrays only)."""
    dim = params["gene_decoder"][0].shape[0]
    _, head_params = _head_selection(params, predict_gene, predict_disease)
    w1c, b1c, w2bd, b2c, _ = _fuse_decoder_heads(head_params, dim)
    ws1, bs1, ws2, bs2, _ = _fuse_decoder_heads(
        [params["sequence_decoder"], params["batch_decoder"]], dim)
    fused = {"token": (w1c, b1c, w2bd, b2c),
             "cell_sb": (ws1, bs1, ws2, bs2)}
    if is_st:
        wnp, bnp, _ = _pad_lanes(*params["neighbor"])
        fused["neighbor"] = (wnp, bnp)
    return fused


# ----------------------------------------------------------------------------
# Parameter construction (deterministic, synthetic)
# ----------------------------------------------------------------------------

def _dense(key, fan_in, fan_out):
    kw, kb = jax.random.split(key)
    scale = 1.0 / jnp.sqrt(jnp.float32(fan_in))
    w = jax.random.uniform(kw, (fan_in, fan_out), jnp.float32, -scale, scale)
    b = jax.random.uniform(kb, (1, fan_out), jnp.float32, -scale, scale)
    return w, b


def make_params(key, dim, max_seq_len, gene_vocab, exp_vocab,
                gene_tokens, exp_bins, disease_tokens, seq_tokens, batch_tokens):
    keys = jax.random.split(key, 12)

    def decoder(k, tokens):
        k1, k2 = jax.random.split(k)
        w1, b1 = _dense(k1, dim, dim * 2)
        w2, b2 = _dense(k2, dim * 2, tokens)
        return (w1, b1, w2, b2)

    params = {
        # stand-in backbone embeddings
        "gene_emb": 0.02 * jax.random.normal(keys[0], (gene_vocab, dim), jnp.float32),
        "exp_emb": 0.02 * jax.random.normal(keys[1], (exp_vocab, dim), jnp.float32),
        "gene_decoder": decoder(keys[2], gene_tokens),
        "exp_bin_decoder": decoder(keys[3], exp_bins),
        "disease_decoder": decoder(keys[4], disease_tokens),
        "sequence_decoder": decoder(keys[5], seq_tokens),
        "batch_decoder": decoder(keys[6], batch_tokens),
    }
    # cell encoder: Conv2d(1,1,(1,dim)), fc1(max_seq_len,512), fc2(512,dim)
    kc, kcb = jax.random.split(keys[7])
    cscale = 1.0 / jnp.sqrt(jnp.float32(dim))
    wc = jax.random.uniform(kc, (1, dim), jnp.float32, -cscale, cscale)   # conv weight
    bc = jax.random.uniform(kcb, (1, 1), jnp.float32, -cscale, cscale)    # conv bias
    w1, b1 = _dense(keys[8], max_seq_len, 512)
    w2, b2 = _dense(keys[9], 512, dim)
    params["cell_encoder"] = (wc, bc, w1, b1, w2, b2)
    # neighbor prediction: Linear(2*dim, 2)
    params["neighbor"] = _dense(keys[10], dim * 2, 2)
    return params


# ----------------------------------------------------------------------------
# StPerformerLM forward
# ----------------------------------------------------------------------------

def st_performer_stub(params, gene_x, exp_x):
    # TODO(synk): the Performer backbone (st_performer) is not part of the
    # provided listing; deterministic embedding-sum stand-in producing [B, S, D].
    return params["gene_emb"][gene_x] + params["exp_emb"][exp_x]


def st_performer_lm_forward(params, fused, gene_x, exp_x, is_st=False,
                            predict_gene=True, predict_disease=False):
    x = st_performer_stub(params, gene_x, exp_x)          # [B, S, D]
    B, S, D = x.shape
    x2d = x.reshape(B * S, D)

    # ---- token-level decoder heads: ONE fused pallas_call -------------------
    w1c, b1c, w2bd, b2c = fused["token"]
    tok = token_heads_apply(x2d, w1c, b1c, w2bd, b2c)      # [B*S, Tpad]

    head_names, head_params = _head_selection(params, predict_gene, predict_disease)
    result, off = {}, 0
    for name, hp in zip(head_names, head_params):
        t = hp[2].shape[1]                                  # static under jit
        result[name] = tok[:, off:off + t].reshape(B, S, t)
        off += t

    # ---- cell path: cell encoder + sequence/batch (+ neighbor) heads --------
    ws1, bs1, ws2, bs2 = fused["cell_sb"]
    if is_st:
        wnp, bnp = fused["neighbor"]
        cell = x[:, 0, :]                                   # CLS token per cell
        sb, nb = cell_heads_apply(x, params["cell_encoder"], (ws1, bs1, ws2, bs2),
                                  cell=cell, nb_params=(wnp, bnp))
        nt = params["neighbor"][0].shape[1]                 # = 2
        neighbor_logit = nb[:, :nt]                         # [B/2, 2]
    else:
        sb = cell_heads_apply(x, params["cell_encoder"], (ws1, bs1, ws2, bs2))
        neighbor_logit = None

    seq_t = params["sequence_decoder"][2].shape[1]
    batch_t = params["batch_decoder"][2].shape[1]
    result["sequence_logit"] = sb[:, :seq_t]
    result["batch_logit"] = sb[:, seq_t:seq_t + batch_t]

    attn_weights = None   # output_attentions=False path
    return result, neighbor_logit, attn_weights


# ----------------------------------------------------------------------------
# Pure-JAX reference of the PyTorch module (for a numerical self-check)
# ----------------------------------------------------------------------------

def reference_forward(params, gene_x, exp_x, is_st, predict_gene, predict_disease):
    with jax.default_matmul_precision("highest"):
        x = st_performer_stub(params, gene_x, exp_x)
        B = x.shape[0]

        def dec(p, z):
            w1, b1, w2, b2 = p
            h = z @ w1 + b1
            h = jnp.where(h > 0, h, 0.01 * h)
            return h @ w2 + b2

        result = {}
        if predict_gene:
            result["gene_logit"] = dec(params["gene_decoder"], x)
        result["exp_bin_logit"] = dec(params["exp_bin_decoder"], x)
        if predict_disease:
            result["disease_logit"] = dec(params["disease_decoder"], x)

        wc, bc, wf1, bf1, wf2, bf2 = params["cell_encoder"]
        v = jnp.maximum(jnp.sum(x * wc, axis=-1) + bc[0, 0], 0.0)
        h = jnp.maximum(v @ wf1 + bf1, 0.0)
        emb = h @ wf2 + bf2
        result["sequence_logit"] = dec(params["sequence_decoder"], emb)
        result["batch_logit"] = dec(params["batch_decoder"], emb)

        neighbor_logit = None
        if is_st:
            wn, bn = params["neighbor"]
            cell = x[:, 0, :]
            half = B // 2
            neighbor_logit = jnp.concatenate([cell[:half], cell[half:]], -1) @ wn + bn
        return result, neighbor_logit


def _check(name, got, want):
    if not jnp.allclose(got, want, rtol=5e-2, atol=1e-3):
        raise AssertionError(
            f"{name} mismatch (max abs err {jnp.max(jnp.abs(got - want))})")


# ----------------------------------------------------------------------------
# Demo
# ----------------------------------------------------------------------------

if __name__ == "__main__":
    B, S, D = 4, 8, 32          # batch, max_seq_len, dim
    gene_vocab, exp_vocab = 20, 12
    gene_tokens, exp_bins = 16, 10
    disease_tokens, seq_tokens, batch_tokens = 4, 6, 4

    key = jax.random.PRNGKey(0)
    kparam, kg, ke = jax.random.split(key, 3)

    params = make_params(kparam, D, S, gene_vocab, exp_vocab,
                         gene_tokens, exp_bins, disease_tokens,
                         seq_tokens, batch_tokens)

    # One-time head packing (outside jit): concat / block-diag / lane padding.
    fused = fuse_heads(params, predict_gene=True, predict_disease=False, is_st=True)

    gene_x = jax.random.randint(kg, (B, S), 0, gene_vocab, dtype=jnp.int32)
    exp_x = jax.random.randint(ke, (B, S), 0, exp_vocab, dtype=jnp.int32)

    fwd = jax.jit(functools.partial(st_performer_lm_forward, is_st=True,
                                    predict_gene=True, predict_disease=False))
    mask_logits, neighbor_logit, attn = fwd(params, fused, gene_x, exp_x)
    jax.block_until_ready(mask_logits)
    jax.block_until_ready(neighbor_logit)

    assert mask_logits["gene_logit"].shape == (B, S, gene_tokens)
    assert mask_logits["exp_bin_logit"].shape == (B, S, exp_bins)
    assert mask_logits["sequence_logit"].shape == (B, seq_tokens)
    assert mask_logits["batch_logit"].shape == (B, batch_tokens)
    assert neighbor_logit.shape == (B // 2, 2)
    assert attn is None

    # numerical self-check of the fused kernels against a pure-JAX reference
    ref_logits, ref_neighbor = reference_forward(params, gene_x, exp_x,
                                                 is_st=True, predict_gene=True,
                                                 predict_disease=False)
    for name in ("gene_logit", "exp_bin_logit", "sequence_logit", "batch_logit"):
        _check(name, mask_logits[name], ref_logits[name])
    _check("neighbor_logit", neighbor_logit, ref_neighbor)

    # is_st=False path (fused cell kernel without the neighbor head)
    mask2, nb2, _ = st_performer_lm_forward(params, fused, gene_x, exp_x, is_st=False)
    jax.block_until_ready(mask2["sequence_logit"])
    assert nb2 is None
    assert mask2["batch_logit"].shape == (B, batch_tokens)

    print("KERNEL_OK")
</pallas_src>

<mosaic_0001>
module attributes {stable_mosaic.version = 11 : i64} {
  func.func @_cell_heads_neighbor_kernel(%arg0: i32, %arg1: memref<4x8x32xf32, #tpu.memory_space<vmem>>, %arg2: memref<4x32xf32, #tpu.memory_space<vmem>>, %arg3: memref<1x32xf32, #tpu.memory_space<vmem>>, %arg4: memref<1x1xf32, #tpu.memory_space<smem>>, %arg5: memref<8x512xf32, #tpu.memory_space<vmem>>, %arg6: memref<1x512xf32, #tpu.memory_space<vmem>>, %arg7: memref<512x32xf32, #tpu.memory_space<vmem>>, %arg8: memref<1x32xf32, #tpu.memory_space<vmem>>, %arg9: memref<32x128xf32, #tpu.memory_space<vmem>>, %arg10: memref<1x128xf32, #tpu.memory_space<vmem>>, %arg11: memref<128x128xf32, #tpu.memory_space<vmem>>, %arg12: memref<1x128xf32, #tpu.memory_space<vmem>>, %arg13: memref<64x128xf32, #tpu.memory_space<vmem>>, %arg14: memref<1x128xf32, #tpu.memory_space<vmem>>, %arg15: memref<4x128xf32, #tpu.memory_space<vmem>>, %arg16: memref<2x128xf32, #tpu.memory_space<vmem>>) attributes {dimension_semantics = [#tpu.dimension_semantics<arbitrary>], iteration_bounds = array<i64: 1>, scalar_prefetch = 0 : i64, scratch_operands = 0 : i64, tpu.core_type = #tpu.core_type<tc>, window_params = [{pipeline_mode = #tpu.pipeline_mode<synchronous>, transform_indices = @transform_0, window_bounds = array<i64: 4, 8, 32>}, {pipeline_mode = #tpu.pipeline_mode<synchronous>, transform_indices = @transform_1, window_bounds = array<i64: 4, 32>}, {pipeline_mode = #tpu.pipeline_mode<synchronous>, transform_indices = @transform_2, window_bounds = array<i64: 1, 32>}, {transform_indices = @transform_3, window_bounds = array<i64: 1, 1>}, {pipeline_mode = #tpu.pipeline_mode<synchronous>, transform_indices = @transform_4, window_bounds = array<i64: 8, 512>}, {pipeline_mode = #tpu.pipeline_mode<synchronous>, transform_indices = @transform_5, window_bounds = array<i64: 1, 512>}, {pipeline_mode = #tpu.pipeline_mode<synchronous>, transform_indices = @transform_6, window_bounds = array<i64: 512, 32>}, {pipeline_mode = #tpu.pipeline_mode<synchronous>, transform_indices = @transform_7, window_bounds = array<i64: 1, 32>}, {pipeline_mode = #tpu.pipeline_mode<synchronous>, transform_indices = @transform_8, window_bounds = array<i64: 32, 128>}, {pipeline_mode = #tpu.pipeline_mode<synchronous>, transform_indices = @transform_9, window_bounds = array<i64: 1, 128>}, {pipeline_mode = #tpu.pipeline_mode<synchronous>, transform_indices = @transform_10, window_bounds = array<i64: 128, 128>}, {pipeline_mode = #tpu.pipeline_mode<synchronous>, transform_indices = @transform_11, window_bounds = array<i64: 1, 128>}, {pipeline_mode = #tpu.pipeline_mode<synchronous>, transform_indices = @transform_12, window_bounds = array<i64: 64, 128>}, {pipeline_mode = #tpu.pipeline_mode<synchronous>, transform_indices = @transform_13, window_bounds = array<i64: 1, 128>}, {pipeline_mode = #tpu.pipeline_mode<synchronous>, transform_indices = @transform_14, window_bounds = array<i64: 4, 128>}, {pipeline_mode = #tpu.pipeline_mode<synchronous>, transform_indices = @transform_15, window_bounds = array<i64: 2, 128>}]} {
    %c0 = arith.constant 0 : index
    %c0_0 = arith.constant 0 : index
    %c0_1 = arith.constant 0 : index
    %0 = vector.load %arg1[%c0, %c0_0, %c0_1] : memref<4x8x32xf32, #tpu.memory_space<vmem>>, vector<4x8x32xf32>
    %c0_2 = arith.constant 0 : index
    %c0_3 = arith.constant 0 : index
    %1 = vector.load %arg3[%c0_2, %c0_3] : memref<1x32xf32, #tpu.memory_space<vmem>>, vector<1x32xf32>
    %c0_4 = arith.constant 0 : index
    %c0_5 = arith.constant 0 : index
    %2 = memref.load %arg4[%c0_4, %c0_5] : memref<1x1xf32, #tpu.memory_space<smem>>
    %c0_6 = arith.constant 0 : index
    %c0_7 = arith.constant 0 : index
    %3 = vector.load %arg5[%c0_6, %c0_7] : memref<8x512xf32, #tpu.memory_space<vmem>>, vector<8x512xf32>
    %c0_8 = arith.constant 0 : index
    %c0_9 = arith.constant 0 : index
    %4 = vector.load %arg6[%c0_8, %c0_9] : memref<1x512xf32, #tpu.memory_space<vmem>>, vector<1x512xf32>
    %c0_10 = arith.constant 0 : index
    %c0_11 = arith.constant 0 : index
    %5 = vector.load %arg7[%c0_10, %c0_11] : memref<512x32xf32, #tpu.memory_space<vmem>>, vector<512x32xf32>
    %c0_12 = arith.constant 0 : index
    %c0_13 = arith.constant 0 : index
    %6 = vector.load %arg8[%c0_12, %c0_13] : memref<1x32xf32, #tpu.memory_space<vmem>>, vector<1x32xf32>
    %c0_14 = arith.constant 0 : index
    %c0_15 = arith.constant 0 : index
    %7 = vector.load %arg9[%c0_14, %c0_15] : memref<32x128xf32, #tpu.memory_space<vmem>>, vector<32x128xf32>
    %c0_16 = arith.constant 0 : index
    %c0_17 = arith.constant 0 : index
    %8 = vector.load %arg10[%c0_16, %c0_17] : memref<1x128xf32, #tpu.memory_space<vmem>>, vector<1x128xf32>
    %c0_18 = arith.constant 0 : index
    %c0_19 = arith.constant 0 : index
    %9 = vector.load %arg11[%c0_18, %c0_19] : memref<128x128xf32, #tpu.memory_space<vmem>>, vector<128x128xf32>
    %c0_20 = arith.constant 0 : index
    %c0_21 = arith.constant 0 : index
    %10 = vector.load %arg12[%c0_20, %c0_21] : memref<1x128xf32, #tpu.memory_space<vmem>>, vector<1x128xf32>
    %11 = vector.shape_cast %1 : vector<1x32xf32> to vector<1x1x32xf32>
    %12 = vector.broadcast %11 : vector<1x1x32xf32> to vector<4x8x32xf32>
    %13 = arith.mulf %0, %12 : vector<4x8x32xf32>
    %cst = arith.constant dense<0.000000e+00> : vector<4x8xf32>
    %14 = vector.multi_reduction <add>, %13, %cst [2] : vector<4x8x32xf32> to vector<4x8xf32>
    %15 = vector.broadcast %2 : f32 to vector<4x8xf32>
    %16 = arith.addf %14, %15 : vector<4x8xf32>
    %cst_22 = arith.constant 0.000000e+00 : f32
    %17 = vector.broadcast %cst_22 : f32 to vector<4x8xf32>
    %18 = arith.maximumf %16, %17 : vector<4x8xf32>
    %cst_23 = arith.constant dense<0.000000e+00> : vector<4x512xf32>
    %19 = tpu.matmul %18, %3, %cst_23 {dimension_numbers = #tpu.dot_dimension_numbers<[1], [0], [0], [1], [0, 0, 1, 1], [], []>} : vector<4x8xf32>, vector<8x512xf32>, vector<4x512xf32> -> vector<4x512xf32>
    %20 = vector.broadcast %4 : vector<1x512xf32> to vector<4x512xf32>
    %21 = arith.addf %19, %20 : vector<4x512xf32>
    %cst_24 = arith.constant 0.000000e+00 : f32
    %22 = vector.broadcast %cst_24 : f32 to vector<4x512xf32>
    %23 = arith.maximumf %21, %22 : vector<4x512xf32>
    %cst_25 = arith.constant dense<0.000000e+00> : vector<4x32xf32>
    %24 = tpu.matmul %23, %5, %cst_25 {dimension_numbers = #tpu.dot_dimension_numbers<[1], [0], [0], [1], [0, 0, 1, 1], [], []>} : vector<4x512xf32>, vector<512x32xf32>, vector<4x32xf32> -> vector<4x32xf32>
    %25 = vector.broadcast %6 : vector<1x32xf32> to vector<4x32xf32>
    %26 = arith.addf %24, %25 : vector<4x32xf32>
    %cst_26 = arith.constant dense<0.000000e+00> : vector<4x128xf32>
    %27 = tpu.matmul %26, %7, %cst_26 {dimension_numbers = #tpu.dot_dimension_numbers<[1], [0], [0], [1], [0, 0, 1, 1], [], []>} : vector<4x32xf32>, vector<32x128xf32>, vector<4x128xf32> -> vector<4x128xf32>
    %28 = vector.broadcast %8 : vector<1x128xf32> to vector<4x128xf32>
    %29 = arith.addf %27, %28 : vector<4x128xf32>
    %cst_27 = arith.constant 0.00999999977 : f32
    %30 = vector.broadcast %cst_27 : f32 to vector<4x128xf32>
    %31 = arith.mulf %30, %29 : vector<4x128xf32>
    %32 = arith.maximumf %29, %31 : vector<4x128xf32>
    %cst_28 = arith.constant dense<0.000000e+00> : vector<4x128xf32>
    %33 = tpu.matmul %32, %9, %cst_28 {dimension_numbers = #tpu.dot_dimension_numbers<[1], [0], [0], [1], [0, 0, 1, 1], [], []>} : vector<4x128xf32>, vector<128x128xf32>, vector<4x128xf32> -> vector<4x128xf32>
    %34 = vector.broadcast %10 : vector<1x128xf32> to vector<4x128xf32>
    %35 = arith.addf %33, %34 : vector<4x128xf32>
    %c0_29 = arith.constant 0 : index
    %c0_30 = arith.constant 0 : index
    %36 = vector.load %arg15[%c0_29, %c0_30] : memref<4x128xf32, #tpu.memory_space<vmem>>, vector<4x128xf32>
    tpu.vector_store %arg15[%c0_29, %c0_30], %35 {strides = array<i32>} : memref<4x128xf32, #tpu.memory_space<vmem>>, vector<4x128xf32>,
    %c0_31 = arith.constant 0 : index
    %c0_32 = arith.constant 0 : index
    %37 = vector.load %arg2[%c0_31, %c0_32] : memref<4x32xf32, #tpu.memory_space<vmem>>, vector<4x32xf32>
    %c0_33 = arith.constant 0 : index
    %c0_34 = arith.constant 0 : index
    %38 = vector.load %arg13[%c0_33, %c0_34] : memref<64x128xf32, #tpu.memory_space<vmem>>, vector<64x128xf32>
    %39 = vector.extract_strided_slice %37 {offsets = [0, 0], sizes = [2, 32], strides = [1, 1]} : vector<4x32xf32> to vector<2x32xf32>
    %40 = vector.extract_strided_slice %38 {offsets = [0, 0], sizes = [32, 128], strides = [1, 1]} : vector<64x128xf32> to vector<32x128xf32>
    %cst_35 = arith.constant dense<0.000000e+00> : vector<2x128xf32>
    %41 = tpu.matmul %39, %40, %cst_35 {dimension_numbers = #tpu.dot_dimension_numbers<[1], [0], [0], [1], [0, 0, 1, 1], [], []>} : vector<2x32xf32>, vector<32x128xf32>, vector<2x128xf32> -> vector<2x128xf32>
    %42 = vector.extract_strided_slice %37 {offsets = [2, 0], sizes = [2, 32], strides = [1, 1]} : vector<4x32xf32> to vector<2x32xf32>
    %43 = vector.extract_strided_slice %38 {offsets = [32, 0], sizes = [32, 128], strides = [1, 1]} : vector<64x128xf32> to vector<32x128xf32>
    %cst_36 = arith.constant dense<0.000000e+00> : vector<2x128xf32>
    %44 = tpu.matmul %42, %43, %cst_36 {dimension_numbers = #tpu.dot_dimension_numbers<[1], [0], [0], [1], [0, 0, 1, 1], [], []>} : vector<2x32xf32>, vector<32x128xf32>, vector<2x128xf32> -> vector<2x128xf32>
    %45 = arith.addf %41, %44 : vector<2x128xf32>
    %c0_37 = arith.constant 0 : index
    %c0_38 = arith.constant 0 : index
    %46 = vector.load %arg14[%c0_37, %c0_38] : memref<1x128xf32, #tpu.memory_space<vmem>>, vector<1x128xf32>
    %47 = vector.broadcast %46 : vector<1x128xf32> to vector<2x128xf32>
    %48 = arith.addf %45, %47 : vector<2x128xf32>
    %c0_39 = arith.constant 0 : index
    %c0_40 = arith.constant 0 : index
    %49 = vector.load %arg16[%c0_39, %c0_40] : memref<2x128xf32, #tpu.memory_space<vmem>>, vector<2x128xf32>
    tpu.vector_store %arg16[%c0_39, %c0_40], %48 {strides = array<i32>} : memref<2x128xf32, #tpu.memory_space<vmem>>, vector<2x128xf32>,
    return
  }
  func.func @transform_0(%arg0: i32) -> (i32, i32, i32) {
    %c0_i32 = arith.constant 0 : i32
    %c0_i32_0 = arith.constant 0 : i32
    %c0_i32_1 = arith.constant 0 : i32
    %c0_i32_2 = arith.constant 0 : i32
    return %c0_i32, %c0_i32_0, %c0_i32_1 : i32, i32, i32
  }
  func.func @transform_1(%arg0: i32) -> (i32, i32) {
    %c0_i32 = arith.constant 0 : i32
    %c0_i32_0 = arith.constant 0 : i32
    %c0_i32_1 = arith.constant 0 : i32
    return %c0_i32, %c0_i32_0 : i32, i32
  }
  func.func @transform_2(%arg0: i32) -> (i32, i32) {
    %c0_i32 = arith.constant 0 : i32
    %c0_i32_0 = arith.constant 0 : i32
    %c0_i32_1 = arith.constant 0 : i32
    return %c0_i32, %c0_i32_0 : i32, i32
  }
  func.func @transform_3(%arg0: i32) -> (i32, i32) {
    %c0_i32 = arith.constant 0 : i32
    %c0_i32_0 = arith.constant 0 : i32
    %c0_i32_1 = arith.constant 0 : i32
    return %c0_i32, %c0_i32_0 : i32, i32
  }
  func.func @transform_4(%arg0: i32) -> (i32, i32) {
    %c0_i32 = arith.constant 0 : i32
    %c0_i32_0 = arith.constant 0 : i32
    %c0_i32_1 = arith.constant 0 : i32
    return %c0_i32, %c0_i32_0 : i32, i32
  }
  func.func @transform_5(%arg0: i32) -> (i32, i32) {
    %c0_i32 = arith.constant 0 : i32
    %c0_i32_0 = arith.constant 0 : i32
    %c0_i32_1 = arith.constant 0 : i32
    return %c0_i32, %c0_i32_0 : i32, i32
  }
  func.func @transform_6(%arg0: i32) -> (i32, i32) {
    %c0_i32 = arith.constant 0 : i32
    %c0_i32_0 = arith.constant 0 : i32
    %c0_i32_1 = arith.constant 0 : i32
    return %c0_i32, %c0_i32_0 : i32, i32
  }
  func.func @transform_7(%arg0: i32) -> (i32, i32) {
    %c0_i32 = arith.constant 0 : i32
    %c0_i32_0 = arith.constant 0 : i32
    %c0_i32_1 = arith.constant 0 : i32
    return %c0_i32, %c0_i32_0 : i32, i32
  }
  func.func @transform_8(%arg0: i32) -> (i32, i32) {
    %c0_i32 = arith.constant 0 : i32
    %c0_i32_0 = arith.constant 0 : i32
    %c0_i32_1 = arith.constant 0 : i32
    return %c0_i32, %c0_i32_0 : i32, i32
  }
  func.func @transform_9(%arg0: i32) -> (i32, i32) {
    %c0_i32 = arith.constant 0 : i32
    %c0_i32_0 = arith.constant 0 : i32
    %c0_i32_1 = arith.constant 0 : i32
    return %c0_i32, %c0_i32_0 : i32, i32
  }
  func.func @transform_10(%arg0: i32) -> (i32, i32) {
    %c0_i32 = arith.constant 0 : i32
    %c0_i32_0 = arith.constant 0 : i32
    %c0_i32_1 = arith.constant 0 : i32
    return %c0_i32, %c0_i32_0 : i32, i32
  }
  func.func @transform_11(%arg0: i32) -> (i32, i32) {
    %c0_i32 = arith.constant 0 : i32
    %c0_i32_0 = arith.constant 0 : i32
    %c0_i32_1 = arith.constant 0 : i32
    return %c0_i32, %c0_i32_0 : i32, i32
  }
  func.func @transform_12(%arg0: i32) -> (i32, i32) {
    %c0_i32 = arith.constant 0 : i32
    %c0_i32_0 = arith.constant 0 : i32
    %c0_i32_1 = arith.constant 0 : i32
    return %c0_i32, %c0_i32_0 : i32, i32
  }
  func.func @transform_13(%arg0: i32) -> (i32, i32) {
    %c0_i32 = arith.constant 0 : i32
    %c0_i32_0 = arith.constant 0 : i32
    %c0_i32_1 = arith.constant 0 : i32
    return %c0_i32, %c0_i32_0 : i32, i32
  }
  func.func @transform_14(%arg0: i32) -> (i32, i32) {
    %c0_i32 = arith.constant 0 : i32
    %c0_i32_0 = arith.constant 0 : i32
    %c0_i32_1 = arith.constant 0 : i32
    return %c0_i32, %c0_i32_0 : i32, i32
  }
  func.func @transform_15(%arg0: i32) -> (i32, i32) {
    %c0_i32 = arith.constant 0 : i32
    %c0_i32_0 = arith.constant 0 : i32
    %c0_i32_1 = arith.constant 0 : i32
    return %c0_i32, %c0_i32_0 : i32, i32
  }
}

module attributes {stable_mosaic.version = 11 : i64} {
  func.func @_token_heads_kernel(%arg0: i32, %arg1: memref<32x32xf32, #tpu.memory_space<vmem>>, %arg2: memref<32x128xf32, #tpu.memory_space<vmem>>, %arg3: memref<1x128xf32, #tpu.memory_space<vmem>>, %arg4: memref<128x128xf32, #tpu.memory_space<vmem>>, %arg5: memref<1x128xf32, #tpu.memory_space<vmem>>, %arg6: memref<32x128xf32, #tpu.memory_space<vmem>>) attributes {dimension_semantics = [#tpu.dimension_semantics<parallel>], iteration_bounds = array<i64: 1>, scalar_prefetch = 0 : i64, scratch_operands = 0 : i64, tpu.core_type = #tpu.core_type<tc>, window_params = [{transform_indices = @transform_0, window_bounds = array<i64: 32, 32>}, {pipeline_mode = #tpu.pipeline_mode<synchronous>, transform_indices = @transform_1, window_bounds = array<i64: 32, 128>}, {pipeline_mode = #tpu.pipeline_mode<synchronous>, transform_indices = @transform_2, window_bounds = array<i64: 1, 128>}, {pipeline_mode = #tpu.pipeline_mode<synchronous>, transform_indices = @transform_3, window_bounds = array<i64: 128, 128>}, {pipeline_mode = #tpu.pipeline_mode<synchronous>, transform_indices = @transform_4, window_bounds = array<i64: 1, 128>}, {transform_indices = @transform_5, window_bounds = array<i64: 32, 128>}]} {
    %c0 = arith.constant 0 : index
    %c0_0 = arith.constant 0 : index
    %0 = vector.load %arg1[%c0, %c0_0] : memref<32x32xf32, #tpu.memory_space<vmem>>, vector<32x32xf32>
    %c0_1 = arith.constant 0 : index
    %c0_2 = arith.constant 0 : index
    %1 = vector.load %arg2[%c0_1, %c0_2] : memref<32x128xf32, #tpu.memory_space<vmem>>, vector<32x128xf32>
    %cst = arith.constant dense<0.000000e+00> : vector<32x128xf32>
    %2 = tpu.matmul %0, %1, %cst {dimension_numbers = #tpu.dot_dimension_numbers<[1], [0], [0], [1], [0, 0, 1, 1], [], []>} : vector<32x32xf32>, vector<32x128xf32>, vector<32x128xf32> -> vector<32x128xf32>
    %c0_3 = arith.constant 0 : index
    %c0_4 = arith.constant 0 : index
    %3 = vector.load %arg3[%c0_3, %c0_4] : memref<1x128xf32, #tpu.memory_space<vmem>>, vector<1x128xf32>
    %4 = vector.broadcast %3 : vector<1x128xf32> to vector<32x128xf32>
    %5 = arith.addf %2, %4 : vector<32x128xf32>
    %cst_5 = arith.constant 0.00999999977 : f32
    %6 = vector.broadcast %cst_5 : f32 to vector<32x128xf32>
    %7 = arith.mulf %6, %5 : vector<32x128xf32>
    %8 = arith.maximumf %5, %7 : vector<32x128xf32>
    %c0_6 = arith.constant 0 : index
    %c0_7 = arith.constant 0 : index
    %9 = vector.load %arg4[%c0_6, %c0_7] : memref<128x128xf32, #tpu.memory_space<vmem>>, vector<128x128xf32>
    %cst_8 = arith.constant dense<0.000000e+00> : vector<32x128xf32>
    %10 = tpu.matmul %8, %9, %cst_8 {dimension_numbers = #tpu.dot_dimension_numbers<[1], [0], [0], [1], [0, 0, 1, 1], [], []>} : vector<32x128xf32>, vector<128x128xf32>, vector<32x128xf32> -> vector<32x128xf32>
    %c0_9 = arith.constant 0 : index
    %c0_10 = arith.constant 0 : index
    %11 = vector.load %arg5[%c0_9, %c0_10] : memref<1x128xf32, #tpu.memory_space<vmem>>, vector<1x128xf32>
    %12 = vector.broadcast %11 : vector<1x128xf32> to vector<32x128xf32>
    %13 = arith.addf %10, %12 : vector<32x128xf32>
    %c0_11 = arith.constant 0 : index
    %c0_12 = arith.constant 0 : index
    %14 = vector.load %arg6[%c0_11, %c0_12] : memref<32x128xf32, #tpu.memory_space<vmem>>, vector<32x128xf32>
    tpu.vector_store %arg6[%c0_11, %c0_12], %13 {strides = array<i32>} : memref<32x128xf32, #tpu.memory_space<vmem>>, vector<32x128xf32>,
    return
  }
  func.func @transform_0(%arg0: i32) -> (i32, i32) {
    %c0_i32 = arith.constant 0 : i32
    %c0_i32_0 = arith.constant 0 : i32
    return %arg0, %c0_i32 : i32, i32
  }
  func.func @transform_1(%arg0: i32) -> (i32, i32) {
    %c0_i32 = arith.constant 0 : i32
    %c0_i32_0 = arith.constant 0 : i32
    %c0_i32_1 = arith.constant 0 : i32
    return %c0_i32, %c0_i32_0 : i32, i32
  }
  func.func @transform_2(%arg0: i32) -> (i32, i32) {
    %c0_i32 = arith.constant 0 : i32
    %c0_i32_0 = arith.constant 0 : i32
    %c0_i32_1 = arith.constant 0 : i32
    return %c0_i32, %c0_i32_0 : i32, i32
  }
  func.func @transform_3(%arg0: i32) -> (i32, i32) {
    %c0_i32 = arith.constant 0 : i32
    %c0_i32_0 = arith.constant 0 : i32
    %c0_i32_1 = arith.constant 0 : i32
    return %c0_i32, %c0_i32_0 : i32, i32
  }
  func.func @transform_4(%arg0: i32) -> (i32, i32) {
    %c0_i32 = arith.constant 0 : i32
    %c0_i32_0 = arith.constant 0 : i32
    %c0_i32_1 = arith.constant 0 : i32
    return %c0_i32, %c0_i32_0 : i32, i32
  }
  func.func @transform_5(%arg0: i32) -> (i32, i32) {
    %c0_i32 = arith.constant 0 : i32
    %c0_i32_0 = arith.constant 0 : i32
    return %arg0, %c0_i32 : i32, i32
  }
}

</mosaic_0001>

<bundles_post_ra>
// kernel: st_performer_lm_forward.2
= control target key start
LH: loop header
LB: loop body
LE: loop exit
PB: predicated region body
PF: predicated region fallthrough
CT: control target
= control target key end

     0   :  { %vm35_vm0 = vcmask 261120   ;;  %s467_s1 = inlined_call_operand.vmem [shape: f32[32,128], index: 1, kind: input, shape index: {}]   ;;  %s468_s0 = inlined_call_operand.vmem [shape: f32[32,32], index: 0, kind: input, shape index: {}]   ;;  %s469_s3 = inlined_call_operand.vmem [shape: f32[128,128], index: 3, kind: input, shape index: {}]   ;;  %s470_s2 = inlined_call_operand.vmem [shape: f32[1,128], index: 2, kind: input, shape index: {}]   ;;  %s471_s4 = inlined_call_operand.vmem [shape: f32[1,128], index: 4, kind: input, shape index: {}]   ;;  %s472_s5 = inlined_call_operand.vmem [shape: f32[32,128], index: 5, kind: output, shape index: {}]  }
   0x1   :  { %v27_v0 = vld [vmem:[%s467_s1 + $0x18] sm:$0xff]  ;;  %v26_v1 = vld [vmem:[%s467_s1 + $0x10] sm:$0xff]  ;;  %v20_v2 = vld [vmem:[%s468_s0] sm:$0xff] }
   0x2   :  { %291 = vmatprep.subr.mxu0 %v27_v0  ;;  %v25_v3 = vld [vmem:[%s467_s1 + $0x8] sm:$0xff]  ;;  %299 = vmatprep.mubr.msk.f32.mxu0 %vm35_vm0, %v20_v2  ;;  %v156_v4 = vld [vmem:[%s469_s3 + $0x78] sm:$0xff]  ;;  %v155_v5 = vld [vmem:[%s469_s3 + $0x70] sm:$0xff] }
   0x3   :  { %292 = vmatpush3.msra.mxu0 %v27_v0  ;;  %305 = vmatprep.subr.mxu1 %v156_v4  ;;  %v24_v6 = vld [vmem:[%s467_s1] sm:$0xff]  ;;  %v154_v7 = vld [vmem:[%s469_s3 + $0x68] sm:$0xff]  ;;  %v22_v10 = vld [vmem:[%s468_s0 + $0x10] sm:$0xff] }
   0x4   :  { %293 = vmatprep.subr.mxu0 %v26_v1  ;;  %306 = vmatpush3.msra.mxu1 %v156_v4  ;;  %v21_v8 = vld [vmem:[%s468_s0 + $0x8] sm:$0xff]  ;;  %v153_v9 = vld [vmem:[%s469_s3 + $0x60] sm:$0xff]  ;;  %v152_v11 = vld [vmem:[%s469_s3 + $0x58] sm:$0xff] }
   0x5   :  { %294 = vmatpush3.msra.mxu0 %v26_v1  ;;  %307 = vmatprep.subr.mxu1 %v155_v5  ;;  %v23_v12 = vld [vmem:[%s468_s0 + $0x18] sm:$0xff]  ;;  %v151_v13 = vld [vmem:[%s469_s3 + $0x50] sm:$0xff]  ;;  %v150_v14 = vld [vmem:[%s469_s3 + $0x48] sm:$0xff] }
   0x6   :  { %295 = vmatprep.subr.mxu0 %v25_v3  ;;  %308 = vmatpush3.msra.mxu1 %v155_v5  ;;  %v149_v15 = vld [vmem:[%s469_s3 + $0x40] sm:$0xff]  ;;  %v148_v16 = vld [vmem:[%s469_s3 + $0x38] sm:$0xff]  ;;  %v147_v17 = vld [vmem:[%s469_s3 + $0x30] sm:$0xff] }
   0x7   :  { %296 = vmatpush3.msra.mxu0 %v25_v3  ;;  %309 = vmatprep.subr.mxu1 %v154_v7  ;;  %v146_v18 = vld [vmem:[%s469_s3 + $0x28] sm:$0xff]  ;;  %v145_v19 = vld [vmem:[%s469_s3 + $0x20] sm:$0xff]  ;;  %v144_v20 = vld [vmem:[%s469_s3 + $0x18] sm:$0xff] }
   0x8   :  { %297 = vmatprep.subr.mxu0 %v24_v6  ;;  %310 = vmatpush3.msra.mxu1 %v154_v7  ;;  %v143_v21 = vld [vmem:[%s469_s3 + $0x10] sm:$0xff]  ;;  %v142_v22 = vld [vmem:[%s469_s3 + $0x8] sm:$0xff]  ;;  %v141_v23 = vld [vmem:[%s469_s3] sm:$0xff] }
   0x9   :  { %298 = vmatpush3.msra.mxu0 %v24_v6  ;;  %311 = vmatprep.subr.mxu1 %v153_v9  ;;  %v257_v24 = vld [vmem:[%s470_s2] ss:$0 sm:$0xff] }
   0xa   :  { %300 = vmatmul.mubr.msk.f32.vlgmr.msra.gmra.mxu0 %vm35_vm0, %v21_v8  ;;  %312 = vmatpush3.msra.mxu1 %v153_v9  ;;  %v262_v41 = vld [vmem:[%s471_s4] ss:$0 sm:$0xff] }
   0xb   :  { %302 = vmatprep.mubr.msk.f32.mxu0 %vm35_vm0, %v22_v10  ;;  %313 = vmatprep.subr.mxu1 %v152_v11 }
   0xc   :  { %314 = vmatpush3.msra.mxu1 %v152_v11 }
   0xd   :  { %315 = vmatprep.subr.mxu1 %v151_v13 }
   0xe   :  { %303 = vmatmul.mubr.msk.f32.gmra.mxu0 %vm35_vm0, %v23_v12  ;;  %316 = vmatpush3.msra.mxu1 %v151_v13 }
   0xf   :  { %317 = vmatprep.subr.mxu1 %v150_v14 }
  0x10   :  { %318 = vmatpush3.msra.mxu1 %v150_v14 }
  0x11   :  { %319 = vmatprep.subr.mxu1 %v149_v15 }
  0x12   :  { %320 = vmatpush3.msra.mxu1 %v149_v15 }
  0x13   :  { %321 = vmatprep.subr.mxu1 %v148_v16 }
  0x14   :  { %322 = vmatpush3.msra.mxu1 %v148_v16 }
  0x15   :  { %323 = vmatprep.subr.mxu1 %v147_v17 }
  0x16   :  { %324 = vmatpush3.msra.mxu1 %v147_v17 }
  0x17   :  { %325 = vmatprep.subr.mxu1 %v146_v18 }
  0x18   :  { %326 = vmatpush3.msra.mxu1 %v146_v18 }
  0x19   :  { %327 = vmatprep.subr.mxu1 %v145_v19 }
  0x1a   :  { %328 = vmatpush3.msra.mxu1 %v145_v19 }
  0x1b   :  { %329 = vmatprep.subr.mxu1 %v144_v20 }
  0x1c   :  { %330 = vmatpush3.msra.mxu1 %v144_v20 }
  0x1d   :  { %331 = vmatprep.subr.mxu1 %v143_v21 }
  0x1e   :  { %332 = vmatpush3.msra.mxu1 %v143_v21 }
  0x1f   :  { %333 = vmatprep.subr.mxu1 %v142_v22 }
  0x20   :  { %334 = vmatpush3.msra.mxu1 %v142_v22 }
  0x21   :  { %335 = vmatprep.subr.mxu1 %v141_v23 }
  0x22   :  { %336 = vmatpush3.msra.mxu1 %v141_v23 }
  0xca   :  { %v301_v25 = vpop.f32.mrf.mxu0 }
  0xcb   :  { %v120_v26 = vadd.f32 %v301_v25, %v257_v24 }
  0xcc   :  { %v114_v27 = vpop.f32.mrf.mxu0 }
  0xcd   :  { %v115_v28 = vadd.f32 %v257_v24, %v114_v27  ;;  %v134_v29 = vmul.f32 0.01, %v120_v26 }
  0xce   :  { %v304_v30 = vpop.f32.mrf.mxu0 }
  0xcf   :  { %v130_v31 = vadd.f32 %v304_v30, %v257_v24  ;;  %v133_v32 = vmul.f32 0.01, %v115_v28  ;;  %v138_v36 = vmax.f32 %v120_v26, %v134_v29 }
  0xd0   :  { %v124_v33 = vpop.f32.mrf.mxu0 }
  0xd1   :  { %v125_v34 = vadd.f32 %v257_v24, %v124_v33  ;;  %v137_v35 = vmax.f32 %v115_v28, %v133_v32  ;;  %v136_v37 = vmul.f32 0.01, %v130_v31 }
  0xd3   :  { %v135_v38 = vmul.f32 0.01, %v125_v34  ;;  %337 = vmatprep.mubr.f32.mxu1 %v137_v35  ;;  %v140_v40 = vmax.f32 %v130_v31, %v136_v37 }
  0xd4   :  { %338 = vmatmul.mubr.f32.vlgmr.msra.gmra.mxu1 %v138_v36 }
  0xd5   :  { %v139_v39 = vmax.f32 %v125_v34, %v135_v38 }
  0xd7   :  { %340 = vmatprep.mubr.f32.mxu1 %v139_v39 }
  0xd8   :  { %341 = vmatmul.mubr.f32.gmra.mxu1 %v140_v40 }
 0x194   :  { %v339_v42 = vpop.f32.mrf.mxu1 }
 0x195   :  { %v236_v43 = vadd.f32 %v339_v42, %v262_v41 }
 0x196   :  { %v230_v44 = vpop.f32.mrf.mxu1 }
 0x197   :  { %250 = vst [vmem:[%s472_s5 + $0x8] sm:$0xff] %v236_v43  ;;  %v231_v45 = vadd.f32 %v262_v41, %v230_v44 }
 0x198   :  { %v342_v46 = vpop.f32.mrf.mxu1 }
 0x199   :  { %249 = vst [vmem:[%s472_s5] sm:$0xff] %v231_v45  ;;  %v246_v47 = vadd.f32 %v342_v46, %v262_v41 }
 0x19a   :  { %v240_v48 = vpop.f32.mrf.mxu1 }
 0x19b   :  { %252 = vst [vmem:[%s472_s5 + $0x18] sm:$0xff] %v246_v47  ;;  %v241_v49 = vadd.f32 %v262_v41, %v240_v48 }
 0x19d   :  { %251 = vst [vmem:[%s472_s5 + $0x10] sm:$0xff] %v241_v49 }

// kernel: st_performer_lm_forward.3
= control target key start
LH: loop header
LB: loop body
LE: loop exit
PB: predicated region body
PF: predicated region fallthrough
CT: control target
= control target key end

     0   :  { %vm159_vm0 = vcmask 261120   ;;  %s1535_s0 = inlined_call_operand.vmem [shape: f32[4,8,32], index: 0, kind: input, shape index: {}]   ;;  %s1536_s1 = inlined_call_operand.vmem [shape: f32[4,32], index: 1, kind: input, shape index: {}]   ;;  %s1537_s2 = inlined_call_operand.vmem [shape: f32[1,32], index: 2, kind: input, shape index: {}]   ;;  %s1538_s3 = inlined_call_operand.<no memory space> [shape: f32[1,1], index: 3, kind: input, shape index: {}]   ;;  %s1539_s4 = inlined_call_operand.vmem [shape: f32[8,512], index: 4, kind: input, shape index: {}]   ;;  %s1540_s5 = inlined_call_operand.vmem [shape: f32[1,512], index: 5, kind: input, shape index: {}]   ;;  %s1541_s6 = inlined_call_operand.vmem [shape: f32[512,32], index: 6, kind: input, shape index: {}]   ;;  %s1542_s7 = inlined_call_operand.vmem [shape: f32[1,32], index: 7, kind: input, shape index: {}]   ;;  %s1543_s8 = inlined_call_operand.vmem [shape: f32[32,128], index: 8, kind: input, shape index: {}]   ;;  %s1544_s9 = inlined_call_operand.vmem [shape: f32[1,128], index: 9, kind: input, shape index: {}]   ;;  %s1545_s10 = inlined_call_operand.vmem [shape: f32[128,128], index: 10, kind: input, shape index: {}]   ;;  %s1546_s11 = inlined_call_operand.vmem [shape: f32[1,128], index: 11, kind: input, shape index: {}]   ;;  %s1547_s12 = inlined_call_operand.vmem [shape: f32[64,128], index: 12, kind: input, shape index: {}]   ;;  %s1548_s13 = inlined_call_operand.vmem [shape: f32[1,128], index: 13, kind: input, shape index: {}]   ;;  %s1549_s14 = inlined_call_operand.vmem [shape: f32[4,128], index: 14, kind: output, shape index: {0}]   ;;  %s1550_s15 = inlined_call_operand.hbm [shape: f32[2,128], index: 15, kind: output, shape index: {1}]  }
   0x1   :  { %v51_v0 = vld [vmem:[%s1535_s0] sm:$0xff]  ;;  %v53_v2 = vld [vmem:[%s1535_s0 + $0x10] sm:$0xff]  ;;  %v52_v5 = vld [vmem:[%s1535_s0 + $0x8] sm:$0xff] }
   0x2   :  { %v865_v1 = vld [vmem:[%s1537_s2] ss:$0 sm:$0xff]  ;;  %v54_v6 = vld [vmem:[%s1535_s0 + $0x18] sm:$0xff] }
   0x3   :  { %v155_v3 = vmul.f32 %v865_v1, %v51_v0  ;;  %v157_v4 = vmul.f32 %v865_v1, %v53_v2 }
   0x4   :  { %22 = vsyncpa [#allocation4], 0  ;;  %v156_v7 = vmul.f32 %v865_v1, %v52_v5  ;;  %v158_v8 = vmul.f32 %v865_v1, %v54_v6  ;;  %v58_v13 = vld [vmem:[%s1539_s4 + $0x8] sm:$0xff]  ;;  %v57_v14 = vld [vmem:[%s1539_s4] sm:$0xff]  ;;  %v1070_v16 = vmov 0.0   ;;  %v182_v37 = vlaneseq }
   0x5   :  { %v160_v9 = vsel %vm159_vm0, %v155_v3, 0.0  ;;  %v166_v10 = vsel %vm159_vm0, %v157_v4, 0.0  ;;  %v60_v15 = vld [vmem:[%s1539_s4 + $0x18] sm:$0xff]  ;;  %263 = vmatprep.subr.mxu0 %v58_v13  ;;  %297 = vmatprep.mubr.f32.mxu0 %v1070_v16  ;;  %v124_v19 = vld [vmem:[%s1541_s6 + $0x1f0] sm:$0xff]  ;;  %v123_v21 = vld [vmem:[%s1541_s6 + $0x1e8] sm:$0xff]  ;;  %v172_v38 = vstv %s1538_s3  ;;  %vm224_vm1 = vcmask 1041409  }
   0x6   :  { %161 = vadd.xlane.f32.xlu0 %v160_v9  ;;  %167 = vadd.xlane.f32.xlu1 %v166_v10  ;;  %v163_v11 = vsel %vm159_vm0, %v156_v7, 0.0  ;;  %v169_v12 = vsel %vm159_vm0, %v158_v8, 0.0  ;;  %v125_v17 = vld [vmem:[%s1541_s6 + $0x1f8] sm:$0xff]  ;;  %v108_v20 = vld [vmem:[%s1541_s6 + $0x170] sm:$0xff]  ;;  %v107_v22 = vld [vmem:[%s1541_s6 + $0x168] sm:$0xff]  ;;  %v1245_v41 = vshrl.u32 %v182_v37, 7 }
   0x7   :  { %264 = vmatpush1.msra.mxu0 %v57_v14  ;;  %910 = vmatprep.subr.mxu1 %v125_v17  ;;  %v109_v18 = vld [vmem:[%s1541_s6 + $0x178] sm:$0xff]  ;;  %v122_v23 = vld [vmem:[%s1541_s6 + $0x1e0] sm:$0xff]  ;;  %v120_v27 = vld [vmem:[%s1541_s6 + $0x1d0] sm:$0xff]  ;;  %v207_v42 = vand.u32 127, %v182_v37  ;;  %vm226_vm2 = vcmask 1042434   ;;  %vm228_vm3 = vcmask 1043459  }
   0x8   :  { %334 = vmatprep.subr.mxu0 %v60_v15  ;;  %911 = vmatpush3.msra.mxu1 %v109_v18  ;;  %v106_v24 = vld [vmem:[%s1541_s6 + $0x160] sm:$0xff]  ;;  %v121_v25 = vld [vmem:[%s1541_s6 + $0x1d8] sm:$0xff]  ;;  %v104_v28 = vld [vmem:[%s1541_s6 + $0x150] sm:$0xff]  ;;  %vm230_vm4 = vcmask 64512   ;;  %vm1071_vm5 = vmmov 0  }
   0x9   :  { %912 = vmatprep.subr.mxu1 %v124_v19  ;;  %v105_v26 = vld [vmem:[%s1541_s6 + $0x158] sm:$0xff]  ;;  %v119_v29 = vld [vmem:[%s1541_s6 + $0x1c8] sm:$0xff]  ;;  %v118_v31 = vld [vmem:[%s1541_s6 + $0x1c0] sm:$0xff]  ;;  %v210_v47 = vsub.s32 %v207_v42, %v1245_v41 }
   0xa   :  { %164 = vadd.xlane.f32.xlu0 %v163_v11  ;;  %170 = vadd.xlane.f32.xlu1 %v169_v12  ;;  %v103_v30 = vld [vmem:[%s1541_s6 + $0x148] sm:$0xff]  ;;  %v102_v32 = vld [vmem:[%s1541_s6 + $0x140] sm:$0xff]  ;;  %v117_v33 = vld [vmem:[%s1541_s6 + $0x1b8] sm:$0xff] }
   0xb   :  { %913 = vmatpush3.msra.mxu1 %v108_v20  ;;  %v101_v34 = vld [vmem:[%s1541_s6 + $0x138] sm:$0xff]  ;;  %v116_v35 = vld [vmem:[%s1541_s6 + $0x1b0] sm:$0xff]  ;;  %v91_v2 = vld [vmem:[%s1541_s6 + $0xe8] sm:$0xff] }
   0xc   :  { %914 = vmatprep.subr.mxu1 %v123_v21  ;;  %v100_v36 = vld [vmem:[%s1541_s6 + $0x130] sm:$0xff]  ;;  %v93_v62 = vld [vmem:[%s1541_s6 + $0xf8] sm:$0xff]  ;;  %v75_v3 = vld [vmem:[%s1541_s6 + $0x68] sm:$0xff] }
   0xd   :  { %915 = vmatpush3.msra.mxu1 %v107_v22  ;;  %v59_v60 = vld [vmem:[%s1539_s4 + $0x10] sm:$0xff]  ;;  %v77_v63 = vld [vmem:[%s1541_s6 + $0x78] sm:$0xff]  ;;  %v90_v4 = vld [vmem:[%s1541_s6 + $0xe0] sm:$0xff] }
   0xe   :  { %916 = vmatprep.subr.mxu1 %v122_v23  ;;  %v92_v0 = vld [vmem:[%s1541_s6 + $0xf0] sm:$0xff]  ;;  %v74_v5 = vld [vmem:[%s1541_s6 + $0x60] sm:$0xff]  ;;  %v89_v6 = vld [vmem:[%s1541_s6 + $0xd8] sm:$0xff] }
   0xf   :  { %917 = vmatpush3.msra.mxu1 %v106_v24  ;;  %v76_v1 = vld [vmem:[%s1541_s6 + $0x70] sm:$0xff]  ;;  %v73_v7 = vld [vmem:[%s1541_s6 + $0x58] sm:$0xff]  ;;  %v87_v10 = vld [vmem:[%s1541_s6 + $0xc8] sm:$0xff] }
  0x10   :  { %918 = vmatprep.subr.mxu1 %v121_v25  ;;  %v88_v8 = vld [vmem:[%s1541_s6 + $0xd0] sm:$0xff]  ;;  %v71_v11 = vld [vmem:[%s1541_s6 + $0x48] sm:$0xff]  ;;  %v86_v12 = vld [vmem:[%s1541_s6 + $0xc0] sm:$0xff] }
  0x11   :  { %919 = vmatpush3.msra.mxu1 %v105_v26  ;;  %v72_v9 = vld [vmem:[%s1541_s6 + $0x50] sm:$0xff]  ;;  %v70_v13 = vld [vmem:[%s1541_s6 + $0x40] sm:$0xff]  ;;  %v85_v14 = vld [vmem:[%s1541_s6 + $0xb8] sm:$0xff] }
  0x12   :  { %920 = vmatprep.subr.mxu1 %v120_v27  ;;  %v69_v15 = vld [vmem:[%s1541_s6 + $0x38] sm:$0xff]  ;;  %v84_v17 = vld [vmem:[%s1541_s6 + $0xb0] sm:$0xff]  ;;  %v83_v19 = vld [vmem:[%s1541_s6 + $0xa8] sm:$0xff] }
  0x13   :  { %921 = vmatpush3.msra.mxu1 %v104_v28  ;;  %v68_v18 = vld [vmem:[%s1541_s6 + $0x30] sm:$0xff]  ;;  %v67_v20 = vld [vmem:[%s1541_s6 + $0x28] sm:$0xff]  ;;  %v82_v21 = vld [vmem:[%s1541_s6 + $0xa0] sm:$0xff] }
  0x14   :  { %922 = vmatprep.subr.mxu1 %v119_v29  ;;  %v66_v22 = vld [vmem:[%s1541_s6 + $0x20] sm:$0xff]  ;;  %v81_v23 = vld [vmem:[%s1541_s6 + $0x98] sm:$0xff]  ;;  %v115_v24 = vld [vmem:[%s1541_s6 + $0x1a8] sm:$0xff] }
  0x15   :  { %923 = vmatpush3.msra.mxu1 %v103_v30  ;;  %v65_v25 = vld [vmem:[%s1541_s6 + $0x18] sm:$0xff]  ;;  %v99_v26 = vld [vmem:[%s1541_s6 + $0x128] sm:$0xff]  ;;  %v80_v27 = vld [vmem:[%s1541_s6 + $0x90] sm:$0xff] }
  0x16   :  { %924 = vmatprep.subr.mxu1 %v118_v31  ;;  %v114_v28 = vld [vmem:[%s1541_s6 + $0x1a0] sm:$0xff]  ;;  %v64_v29 = vld [vmem:[%s1541_s6 + $0x10] sm:$0xff]  ;;  %v79_v31 = vld [vmem:[%s1541_s6 + $0x88] sm:$0xff] }
  0x17   :  { %925 = vmatpush3.msra.mxu1 %v102_v32  ;;  %v98_v30 = vld [vmem:[%s1541_s6 + $0x120] sm:$0xff]  ;;  %v113_v32 = vld [vmem:[%s1541_s6 + $0x198] sm:$0xff] }
  0x18   :  { %926 = vmatprep.subr.mxu1 %v117_v33  ;;  %v63_v33 = vld [vmem:[%s1541_s6 + $0x8] sm:$0xff]  ;;  %v62_v37 = vld [vmem:[%s1541_s6] sm:$0xff] }
  0x19   :  { %927 = vmatpush3.msra.mxu1 %v101_v34  ;;  %v97_v34 = vld [vmem:[%s1541_s6 + $0x118] sm:$0xff]  ;;  %v110_v42 = vld [vmem:[%s1541_s6 + $0x180] sm:$0xff] }
  0x1a   :  { %928 = vmatprep.subr.mxu1 %v116_v35  ;;  %v78_v35 = vld [vmem:[%s1541_s6 + $0x80] sm:$0xff] }
  0x1b   :  { %929 = vmatpush3.msra.mxu1 %v100_v36  ;;  %v112_v36 = vld [vmem:[%s1541_s6 + $0x190] sm:$0xff] }
  0x1c   :  { %930 = vmatprep.subr.mxu1 %v115_v24 }
  0x1d   :  { %931 = vmatpush3.msra.mxu1 %v99_v26  ;;  %v691_v26 = vld [vmem:[%s1547_s12 + $0x38] sm:$0xff] }
  0x1e   :  { %932 = vmatprep.subr.mxu1 %v114_v28  ;;  %v683_v28 = vld [vmem:[%s1536_s1] sm:$0xf] }
  0x1f   :  { %933 = vmatpush3.msra.mxu1 %v98_v30  ;;  %v688_v30 = vld [vmem:[%s1547_s12 + $0x20] sm:$0xff] }
  0x20   :  { %934 = vmatprep.subr.mxu1 %v113_v32  ;;  %v687_v32 = vld [vmem:[%s1547_s12 + $0x18] sm:$0xff] }
  0x21   :  { %935 = vmatpush3.msra.mxu1 %v97_v34  ;;  %v685_v34 = vld [vmem:[%s1547_s12 + $0x8] sm:$0xff] }
  0x22   :  { %936 = vmatprep.subr.mxu1 %v112_v36  ;;  %v135_v36 = vld [vmem:[%s1545_s10 + $0x18] sm:$0xff] }
  0x8f   :  { %v162_v39 = vpop.xlane.xlu0 %161  ;;  %v168_v40 = vpop.xlane.xlu1 %167 }
  0x90   :  { %v173_v43 = vadd.f32 %v172_v38, %v162_v39  ;;  %v175_v44 = vadd.f32 %v172_v38, %v168_v40  ;;  %v111_v39 = vld [vmem:[%s1541_s6 + $0x188] sm:$0xff] }
  0x91   :  { %v95_v40 = vld [vmem:[%s1541_s6 + $0x108] sm:$0xff] }
  0x92   :  { %v177_v48 = vmax.f32 %v173_v43, 0.0  ;;  %v179_v51 = vmax.f32 %v175_v44, 0.0  ;;  %v94_v43 = vld [vmem:[%s1541_s6 + $0x100] sm:$0xff]  ;;  %v184_v44 = vsub.s32 0, %v1245_v41 }
  0x93   :  { %v165_v45 = vpop.xlane.xlu0 %164  ;;  %v171_v46 = vpop.xlane.xlu1 %170 }
  0x94   :  { %v174_v49 = vadd.f32 %v172_v38, %v165_v45  ;;  %v176_v50 = vadd.f32 %v172_v38, %v171_v46  ;;  %v211_v54 = vrot.slane %v177_v48, %v210_v47  ;;  %v219_v57 = vrot.slane %v179_v51, %v210_v47  ;;  %v96_v38 = vld [vmem:[%s1541_s6 + $0x110] sm:$0xff]  ;;  %v61_v45 = vld [vmem:[%s1540_s5] sm:$0xf] }
  0x95   :  { %937 = vmatpush3.msra.mxu1 %v96_v38  ;;  %v188_v46 = vsub.s32 1, %v1245_v41  ;;  %v192_v48 = vsub.s32 2, %v1245_v41  ;;  %v133_v38 = vld [vmem:[%s1545_s10 + $0x8] sm:$0xff] }
  0x96   :  { %v178_v52 = vmax.f32 %v174_v49, 0.0  ;;  %v180_v53 = vmax.f32 %v176_v50, 0.0  ;;  %938 = vmatprep.subr.mxu1 %v111_v39  ;;  %v196_v50 = vsub.s32 3, %v1245_v41  ;;  %v130_v41 = vld [vmem:[%s1543_s8 + $0x18] sm:$0xff]  ;;  %v132_v39 = vld [vmem:[%s1545_s10] sm:$0xff] }
  0x97   :  { %939 = vmatpush3.msra.mxu1 %v95_v40  ;;  %v189_v49 = vrot.slane %v61_v45, %v188_v46  ;;  %v869_v40 = vld [vmem:[%s1544_s9] ss:$0 sm:$0xff] }
  0x98   :  { %v215_v55 = vrot.slane %v178_v52, %v210_v47  ;;  %v223_v56 = vrot.slane %v180_v53, %v210_v47  ;;  %940 = vmatprep.subr.mxu1 %v110_v42  ;;  %v185_v47 = vrot.slane %v61_v45, %v184_v44 }
  0x99   :  { %941 = vmatpush3.msra.mxu1 %v94_v43 }
  0x9a   :  { %v225_v58 = vsel %vm224_vm1, %v215_v55, %v211_v54  ;;  %988 = vmatprep.subr.mxu1 %v1070_v16  ;;  %v193_v54 = vrot.slane %v61_v45, %v192_v48 }
  0x9b   :  { %v227_v59 = vsel %vm226_vm2, %v219_v57, %v225_v58 }
  0x9c   :  { %v229_v61 = vsel %vm228_vm3, %v223_v56, %v227_v59  ;;  %v197_v56 = vrot.slane %v61_v45, %v196_v50 }
  0x9d   :  { %866 = vmatmul.mubr.msk.f32.vlgmr.msra.gmra.mxu0 %vm230_vm4, %v229_v61 }
  0x9e   :  { %335 = vmatpush1.msra.mxu0 %v59_v60  ;;  %368 = vmatprep.mubr.f32.mxu0 %v1070_v16 }
  0x9f   :  { %875 = vmatprep.subr.mxu0 %v93_v62 }
  0xa1   :  { %867 = vmatmul.mubr.msk.f32.vlgmr.msra.gmra.mxu0 %vm230_vm4, %v229_v61 }
  0xa2   :  { %876 = vmatpush3.msra.mxu0 %v77_v63 }
  0xa3   :  { %877 = vmatprep.subr.mxu0 %v92_v0 }
  0xa4   :  { %878 = vmatpush3.msra.mxu0 %v76_v1  ;;  %v129_v1 = vld [vmem:[%s1543_s8 + $0x10] sm:$0xff] }
  0xa5   :  { %879 = vmatprep.subr.mxu0 %v91_v2  ;;  %v128_v2 = vld [vmem:[%s1543_s8 + $0x8] sm:$0xff] }
  0xa6   :  { %880 = vmatpush3.msra.mxu0 %v75_v3  ;;  %v127_v3 = vld [vmem:[%s1543_s8] sm:$0xff] }
  0xa7   :  { %881 = vmatprep.subr.mxu0 %v90_v4  ;;  %v147_v4 = vld [vmem:[%s1545_s10 + $0x78] sm:$0xff] }
  0xa8   :  { %882 = vmatpush3.msra.mxu0 %v74_v5  ;;  %v146_v5 = vld [vmem:[%s1545_s10 + $0x70] sm:$0xff] }
  0xa9   :  { %883 = vmatprep.subr.mxu0 %v89_v6  ;;  %v145_v6 = vld [vmem:[%s1545_s10 + $0x68] sm:$0xff] }
  0xaa   :  { %884 = vmatpush3.msra.mxu0 %v73_v7  ;;  %v144_v7 = vld [vmem:[%s1545_s10 + $0x60] sm:$0xff] }
  0xab   :  { %885 = vmatprep.subr.mxu0 %v88_v8  ;;  %v143_v8 = vld [vmem:[%s1545_s10 + $0x58] sm:$0xff] }
  0xac   :  { %886 = vmatpush3.msra.mxu0 %v72_v9  ;;  %v142_v9 = vld [vmem:[%s1545_s10 + $0x50] sm:$0xff] }
  0xad   :  { %887 = vmatprep.subr.mxu0 %v87_v10  ;;  %v141_v10 = vld [vmem:[%s1545_s10 + $0x48] sm:$0xff] }
  0xae   :  { %888 = vmatpush3.msra.mxu0 %v71_v11  ;;  %v140_v11 = vld [vmem:[%s1545_s10 + $0x40] sm:$0xff] }
  0xaf   :  { %889 = vmatprep.subr.mxu0 %v86_v12  ;;  %v139_v12 = vld [vmem:[%s1545_s10 + $0x38] sm:$0xff] }
  0xb0   :  { %890 = vmatpush3.msra.mxu0 %v70_v13  ;;  %v138_v13 = vld [vmem:[%s1545_s10 + $0x30] sm:$0xff] }
  0xb1   :  { %891 = vmatprep.subr.mxu0 %v85_v14  ;;  %v137_v14 = vld [vmem:[%s1545_s10 + $0x28] sm:$0xff] }
  0xb2   :  { %892 = vmatpush3.msra.mxu0 %v69_v15  ;;  %v136_v15 = vld [vmem:[%s1545_s10 + $0x20] sm:$0xff] }
  0xb3   :  { %893 = vmatprep.subr.mxu0 %v84_v17 }
  0xb4   :  { %894 = vmatpush3.msra.mxu0 %v68_v18 }
  0xb5   :  { %895 = vmatprep.subr.mxu0 %v83_v19 }
  0xb6   :  { %896 = vmatpush3.msra.mxu0 %v67_v20  ;;  %v868_v20 = vld [vmem:[%s1542_s7] ss:$0 sm:$0xff] }
  0xb7   :  { %897 = vmatprep.subr.mxu0 %v82_v21 }
  0xb8   :  { %898 = vmatpush3.msra.mxu0 %v66_v22 }
  0xb9   :  { %899 = vmatprep.subr.mxu0 %v81_v23 }
  0xba   :  { %900 = vmatpush3.msra.mxu0 %v65_v25 }
  0xbb   :  { %901 = vmatprep.subr.mxu0 %v80_v27  ;;  %v690_v27 = vld [vmem:[%s1547_s12 + $0x30] sm:$0xff] }
  0xbc   :  { %902 = vmatpush3.msra.mxu0 %v64_v29  ;;  %v689_v29 = vld [vmem:[%s1547_s12 + $0x28] sm:$0xff] }
  0xbd   :  { %903 = vmatprep.subr.mxu0 %v79_v31  ;;  %v693_v31 = vrot.slane %v683_v28, 2 }
  0xbe   :  { %904 = vmatpush3.msra.mxu0 %v63_v33  ;;  %v686_v33 = vld [vmem:[%s1547_s12 + $0x10] sm:$0xff] }
  0xbf   :  { %905 = vmatprep.subr.mxu0 %v78_v35  ;;  %v684_v35 = vld [vmem:[%s1547_s12] sm:$0xff] }
  0xc0   :  { %906 = vmatpush3.msra.mxu0 %v62_v37  ;;  %v134_v37 = vld [vmem:[%s1545_s10 + $0x10] sm:$0xff]  ;;  %s1072_s10 = smov [#allocation3]  }
  0xc1   :  { %977 = vmatprep.subr.mxu0 %v1070_v16  ;;  %s855_s16 = sshll.u32 %s1072_s10, 4  ;;  %s856_s16 = int_to_ptr.vmem [resolvable:$true] %s855_s16 }
  0xc2   :  { %s1048_s9 = scalar_lea.vmem %s856_s16, 32  ;;  %p1053_p1 = scmp.lt.s32.totalorder %s856_s16, %s856_s16 }
  0xc3   :  { %p1049_p0 = scmp.ne.s32.totalorder %s856_s16, %s1048_s9  ;;  %p1054_p2 = scmp.lt.s32.totalorder %s1048_s9, %s1048_s9 }
  0xc5   :  { %p1055_p3 = por %p1054_p2, %p1053_p1 }
  0xc7   :  { %p1056_p4 = pnand %p1055_p3, %p1049_p0 }
 0x15d   :  { %v299_v51 = vpop.f32.mrf.mxu0 }
 0x15e   :  { %v300_v52 = vadd.f32 %v299_v51, %v185_v47  ;;  %v874_v51 = vld [vmem:[%s1548_s13] ss:$0 sm:$0xff] }
 0x15f   :  { %v301_v53 = vpop.f32.mrf.mxu0 }
 0x160   :  { %v302_v55 = vadd.f32 %v301_v53, %v189_v49  ;;  %v375_v59 = vmax.f32 %v300_v52, 0.0 }
 0x161   :  { %v370_v57 = vpop.f32.mrf.mxu0 }
 0x162   :  { %v376_v58 = vmax.f32 %v302_v55, 0.0  ;;  %v371_v60 = vadd.f32 %v370_v57, %v193_v54 }
 0x163   :  { %v372_v61 = vpop.f32.mrf.mxu0 }
 0x164   :  { %449 = vmatprep.mubr.f32.mxu0 %v376_v58  ;;  %v373_v62 = vadd.f32 %v372_v61, %v197_v56  ;;  %v377_v0 = vmax.f32 %v371_v60, 0.0 }
 0x165   :  { %450 = vmatmul.mubr.f32.vlgmr.msra.gmra.mxu0 %v375_v59 }
 0x166   :  { %v378_v63 = vmax.f32 %v373_v62, 0.0  ;;  %978 = vmatpush3.msra.mxu0 %v130_v41  ;;  %985 = vmatprep.mubr.msk.f32.mxu0 %vm1071_vm5, %v1070_v16 }
 0x167   :  { %979 = vmatprep.subr.mxu0 %v1070_v16 }
 0x168   :  { %519 = vmatprep.mubr.f32.mxu1 %v378_v63  ;;  %980 = vmatpush3.msra.mxu0 %v129_v1 }
 0x169   :  { %520 = vmatmul.mubr.f32.vlgmr.msra.gmra.mxu1 %v377_v0  ;;  %981 = vmatprep.subr.mxu0 %v1070_v16 }
 0x16a   :  { %982 = vmatpush3.msra.mxu0 %v128_v2  ;;  %1020 = vmatprep.mubr.msk.f32.mxu1 %vm1071_vm5, %v1070_v16 }
 0x16b   :  { %983 = vmatprep.subr.mxu0 %v1070_v16  ;;  %989 = vmatpush3.msra.mxu1 %v147_v4 }
 0x16c   :  { %984 = vmatpush3.msra.mxu0 %v127_v3  ;;  %990 = vmatprep.subr.mxu1 %v1070_v16 }
 0x16d   :  { %1023 = vmatprep.subr.mxu0 %v1070_v16  ;;  %991 = vmatpush3.msra.mxu1 %v146_v5 }
 0x16e   :  { %992 = vmatprep.subr.mxu1 %v1070_v16 }
 0x16f   :  { %993 = vmatpush3.msra.mxu1 %v145_v6 }
 0x170   :  { %994 = vmatprep.subr.mxu1 %v1070_v16 }
 0x171   :  { %995 = vmatpush3.msra.mxu1 %v144_v7 }
 0x172   :  { %996 = vmatprep.subr.mxu1 %v1070_v16 }
 0x173   :  { %997 = vmatpush3.msra.mxu1 %v143_v8 }
 0x174   :  { %998 = vmatprep.subr.mxu1 %v1070_v16 }
 0x175   :  { %999 = vmatpush3.msra.mxu1 %v142_v9 }
 0x176   :  { %1000 = vmatprep.subr.mxu1 %v1070_v16 }
 0x177   :  { %1001 = vmatpush3.msra.mxu1 %v141_v10 }
 0x178   :  { %1002 = vmatprep.subr.mxu1 %v1070_v16 }
 0x179   :  { %1003 = vmatpush3.msra.mxu1 %v140_v11 }
 0x17a   :  { %1004 = vmatprep.subr.mxu1 %v1070_v16 }
 0x17b   :  { %1005 = vmatpush3.msra.mxu1 %v139_v12 }
 0x17c   :  { %1006 = vmatprep.subr.mxu1 %v1070_v16 }
 0x17d   :  { %1007 = vmatpush3.msra.mxu1 %v138_v13 }
 0x17e   :  { %1008 = vmatprep.subr.mxu1 %v1070_v16 }
 0x17f   :  { %1009 = vmatpush3.msra.mxu1 %v137_v14 }
 0x180   :  { %1010 = vmatprep.subr.mxu1 %v1070_v16 }
 0x181   :  { %1011 = vmatpush3.msra.mxu1 %v136_v15 }
 0x182   :  { %1012 = vmatprep.subr.mxu1 %v1070_v16 }
 0x183   :  { %1013 = vmatpush3.msra.mxu1 %v135_v36 }
 0x184   :  { %1014 = vmatprep.subr.mxu1 %v1070_v16 }
 0x185   :  { %1015 = vmatpush3.msra.mxu1 %v134_v37 }
 0x186   :  { %1016 = vmatprep.subr.mxu1 %v1070_v16 }
 0x187   :  { %1017 = vmatpush3.msra.mxu1 %v133_v38 }
 0x188   :  { %1018 = vmatprep.subr.mxu1 %v1070_v16 }
 0x189   :  { %1019 = vmatpush3.msra.mxu1 %v132_v39 }
 0x225   :  { %v907_v17 = vpop.f32.mrf.mxu0 }
 0x227   :  { %v908_v18 = vpop.f32.mrf.mxu0 }
 0x228   :  { %v909_v19 = vadd.f32 %v908_v18, %v907_v17 }
 0x229   :  { %v942_v21 = vpop.f32.mrf.mxu1 }
 0x22a   :  { %v452_v23 = vadd.f32 %v909_v19, %v868_v20 }
 0x22b   :  { %v943_v22 = vpop.f32.mrf.mxu1 }
 0x22c   :  { %v944_v24 = vadd.f32 %v943_v22, %v942_v21 }
 0x22e   :  { %v522_v25 = vadd.f32 %v944_v24, %v452_v23 }
 0x230   :  { %986 = vmatmul.mubr.msk.f32.vlgmr.msra.gmra.mxu0 %vm159_vm0, %v522_v25 }
 0x231   :  { %1024 = vmatpush3.msra.mxu0 %v691_v26  ;;  %1031 = vmatprep.mubr.msk.f32.mxu0 %vm1071_vm5, %v1070_v16 }
 0x232   :  { %1025 = vmatprep.subr.mxu0 %v1070_v16 }
 0x233   :  { %1026 = vmatpush3.msra.mxu0 %v690_v27 }
 0x234   :  { %1027 = vmatprep.subr.mxu0 %v1070_v16 }
 0x235   :  { %1028 = vmatpush3.msra.mxu0 %v689_v29 }
 0x236   :  { %1029 = vmatprep.subr.mxu0 %v1070_v16 }
 0x237   :  { %1030 = vmatpush3.msra.mxu0 %v688_v30 }
 0x238   :  { %1034 = vmatprep.subr.mxu0 %v1070_v16  ;;  %1032 = vmatmul.mubr.msk.f32.vlgmr.msra.gmra.mxu0 %vm159_vm0, %v693_v31 }
 0x239   :  { %1035 = vmatpush3.msra.mxu0 %v687_v32  ;;  %1042 = vmatprep.mubr.msk.f32.mxu0 %vm1071_vm5, %v1070_v16 }
 0x23a   :  { %1036 = vmatprep.subr.mxu0 %v1070_v16 }
 0x23b   :  { %1037 = vmatpush3.msra.mxu0 %v686_v33 }
 0x23c   :  { %1038 = vmatprep.subr.mxu0 %v1070_v16 }
 0x23d   :  { %1039 = vmatpush3.msra.mxu0 %v685_v34 }
 0x23e   :  { %1040 = vmatprep.subr.mxu0 %v1070_v16 }
 0x23f   :  { %1041 = vmatpush3.msra.mxu0 %v684_v35 }
 0x240   :  { %1043 = vmatmul.mubr.msk.f32.vlgmr.msra.gmra.mxu0 %vm159_vm0, %v683_v28 }
 0x2f0   :  { %v600_v42 = vpop.f32.mrf.mxu0 }
 0x2f1   :  { %v601_v43 = vadd.f32 %v869_v40, %v600_v42 }
 0x2f2   :  { %v987_v44 = vpop.f32.mrf.mxu0 }
 0x2f3   :  { %v604_v45 = vmul.f32 0.01, %v601_v43 }
 0x2f5   :  { %v605_v46 = vmax.f32 %v601_v43, %v604_v45 }
 0x2f7   :  { %1021 = vmatmul.mubr.f32.vlgmr.msra.gmra.mxu1 %v605_v46 }
 0x2f8   :  { %v762_v47 = vpop.f32.mrf.mxu0 }
 0x2fa   :  { %v1033_v48 = vpop.f32.mrf.mxu0 }
 0x300   :  { %v834_v49 = vpop.f32.mrf.mxu0 }
 0x301   :  { %v835_v16 = vadd.f32 %v834_v49, %v762_v47 }
 0x302   :  { %v1044_v50 = vpop.f32.mrf.mxu0 }
 0x303   :  { %v845_v52 = vadd.f32 %v874_v51, %v835_v16 }
 0x305   :  { %846 = vst [vmem:[#allocation3] sm:$0x3] %v845_v52 }
 0x306   :  { %1059 = shalt.err (!%p1056_p4)
}
 0x307   :  { %858 = dma.vmem_to_hbm [thread:$0]  %s856_s16, 32, %s1550_s15, [#allocation4]   ;;  %v871_v53 = vld [vmem:[%s1546_s11] ss:$0 sm:$0xff] }
 0x3b7   :  { %v678_v54 = vpop.f32.mrf.mxu1 }
 0x3b8   :  { %v679_v55 = vadd.f32 %v871_v53, %v678_v54 }
 0x3b9   :  { %v1022_v56 = vpop.f32.mrf.mxu1 }
 0x3ba   :  { %682 = vst [vmem:[%s1549_s14] sm:$0xf] %v679_v55 }
 0x3bb   :  { %1068 = dma.done.wait [#allocation4], 32  }
 0x3bc   :  { %1069 = vsyncadd [#allocation4], 4294967264 }
 0x3bd   :  { %864 = vsyncpa [#allocation4], 1 }

</bundles_post_ra>
